<compile_context>
chip_gen: v7x
topology: tpu7x:2x2x1
jax: 0.10.0
libtpu: 0.0.40
codegen_flags: <defaults>
</compile_context>

<pallas_src>
import functools

import jax
import jax.numpy as jnp
from jax import lax
from jax.experimental import pallas as pl
from jax.experimental.pallas import tpu as pltpu


def _round_up(x, m):
    return ((x + m - 1) // m) * m


def _vq_stats_kernel(w_ref, wsq_ref, x_ref, dw_ref, cnt_ref, xx_ref, *,
                     tile, chunk, n_rows, tiles_per_part, has_partial):
    """Accumulate per-partial (dw, counts, sum_xx) over streamed x tiles."""
    c = pl.program_id(0)          # parallel partial (per-TensorCore on v7x)
    i = pl.program_id(1)          # reduction over this partial's tiles
    n_chunks = tile // chunk
    K, D = w_ref.shape

    # ---- init this partial's resident accumulators (outputs) ---------------
    @pl.when(i == 0)
    def _init():
        dw_ref[...] = jnp.zeros_like(dw_ref)      # (K, D)
        cnt_ref[...] = jnp.zeros_like(cnt_ref)    # (1, K)
        xx_ref[...] = jnp.zeros_like(xx_ref)      # (1, 1)

    w = w_ref[...]                                # (K, D) f32, resident
    wsq = wsq_ref[...]                            # (1, K) f32, hoisted ||w_k||^2
    row_start = (c * tiles_per_part + i) * tile   # global row offset of tile

    def accumulate(masked):
        def chunk_body(j, carry):
            if isinstance(j, int):                # single-chunk fast path
                r0 = j * chunk
            else:
                r0 = pl.multiple_of(j * chunk, chunk)
            # cast AFTER the DMA: HBM streams the original dtype (bf16-friendly)
            x = x_ref[pl.ds(r0, chunk), :].astype(jnp.float32)   # (chunk, D)
            if masked:
                row = lax.broadcasted_iota(jnp.int32, (chunk, 1), 0)
                valid = (row_start + r0 + row) < n_rows          # (chunk, 1)
                x = jnp.where(valid, x, 0.0)      # neutralize OOB garbage rows

            # nearest code: argmin_k ||x||^2 + ||w_k||^2 - 2 x.w_k
            # (per-row ||x||^2 dropped -- argmin invariant)
            xw = lax.dot_general(x, w, (((1,), (1,)), ((), ())),
                                 preferred_element_type=jnp.float32)  # (chunk,K)
            dist = wsq - 2.0 * xw
            col = lax.broadcasted_iota(jnp.int32, (chunk, K), 1)
            mn = jnp.min(dist, axis=1, keepdims=True)
            idx = jnp.min(jnp.where(dist == mn, col, jnp.int32(K)),
                          axis=1, keepdims=True)                 # first-index tie
            enc = (col == idx).astype(jnp.float32)               # (chunk, K)
            if masked:
                enc = enc * valid.astype(jnp.float32)

            # dw += enc^T @ x (MXU, no materialized transpose);
            # counts += sum(enc, 0) (lane-layout, no 1-lane MXU push)
            dw_ref[...] += lax.dot_general(enc, x, (((0,), (0,)), ((), ())),
                                           preferred_element_type=jnp.float32)
            cnt_ref[...] += jnp.sum(enc, axis=0, keepdims=True)
            xx_ref[...] = xx_ref[...] + jnp.sum(x * x)
            return carry

        if n_chunks == 1:
            chunk_body(0, 0)
        else:
            lax.fori_loop(0, n_chunks, chunk_body, 0, unroll=False)

    if has_partial:
        # Only the last real tile (ragged) / clamped overflow tiles take the
        # masked branch; the steady state runs unmasked.
        is_full = row_start + tile <= n_rows

        @pl.when(is_full)
        def _fast():
            accumulate(masked=False)

        @pl.when(jnp.logical_not(is_full))
        def _slow():
            accumulate(masked=True)
    else:
        accumulate(masked=False)


def vq_vae_forward(inputs, weight, ema_w, ema_cluster_size,
                   commitment_cost=0.25, decay=0.9, eps=1e-5,
                   tile_n=None, chunk_n=None, num_partials=None):
    """Returns ((loss_vq, None, None), new_weight, new_ema_w, new_ema_cluster_size)."""
    K, D = weight.shape
    flat = inputs.reshape(-1, D)                  # original dtype, no HBM copy
    N = flat.shape[0]

    w32 = weight.astype(jnp.float32)
    ema32 = ema_w.astype(jnp.float32)
    ecs32 = ema_cluster_size.astype(jnp.float32)
    wsq = jnp.sum(w32 * w32, axis=1)[None, :]     # (1, K), hoisted out of kernel

    # ---- tile / chunk selection (D- and dtype-aware) ------------------------
    itemsize = int(flat.dtype.itemsize)
    lane_d = _round_up(D, 128)                    # lane-padded row width

    chunk = 512 if chunk_n is None else int(chunk_n)
    chunk = max(8, _round_up(chunk, 8))
    if tile_n is None:
        # ~4 MiB (lane-padded) per x DMA block amortizes the ~0.35us/step cost.
        target_block_bytes = 4 * 1024 * 1024
        tile = max(chunk,
                   (target_block_bytes // (lane_d * itemsize)) // chunk * chunk)
    else:
        tile = max(8, _round_up(int(tile_n), 8))
    tile = min(tile, _round_up(N, 8))             # don't exceed the problem size
    chunk = min(chunk, tile)
    tile = _round_up(tile, chunk)                 # tile walked in `chunk` rows

    num_tiles = pl.cdiv(N, tile)
    n_parts = num_partials if num_partials is not None else (2 if num_tiles >= 2 else 1)
    n_parts = max(1, min(int(n_parts), num_tiles))
    tpp = pl.cdiv(num_tiles, n_parts)             # tiles per partial
    total_tiles = n_parts * tpp
    has_partial = (N % tile != 0) or (total_tiles != num_tiles)

    if total_tiles == num_tiles:
        x_index_map = lambda c, i: (c * tpp + i, 0)
    else:
        # clamp overflow steps onto the last real block; the kernel masks them out
        x_index_map = lambda c, i: (jnp.minimum(c * tpp + i, num_tiles - 1), 0)

    # ---- generation-dependent VMEM budget -----------------------------------
    try:
        vmem_phys = int(pltpu.get_tpu_info().vmem_capacity_bytes)
    except Exception:
        vmem_phys = 64 * 1024 * 1024              # v7x-safe fallback
    vmem_limit = int(min(max(vmem_phys // 2, 16 * 1024 * 1024), 64 * 1024 * 1024))

    kernel = functools.partial(
        _vq_stats_kernel,
        tile=int(tile), chunk=int(chunk), n_rows=int(N),
        tiles_per_part=int(tpp), has_partial=bool(has_partial))

    out_shapes = (
        jax.ShapeDtypeStruct((n_parts, K, D), jnp.float32),   # per-partial dw
        jax.ShapeDtypeStruct((n_parts, 1, K), jnp.float32),   # per-partial counts
        jax.ShapeDtypeStruct((n_parts, 1, 1), jnp.float32),   # per-partial sum(x^2)
    )

    cost = pl.CostEstimate(
        flops=4 * N * K * D + 4 * N * K,
        transcendentals=0,
        bytes_accessed=N * D * itemsize + 4 * (K * D + K)
        + 4 * n_parts * (K * D + K + 1),
    )

    dw_p, cnt_p, xx_p = pl.pallas_call(
        kernel,
        out_shape=out_shapes,
        grid=(n_parts, num_tiles if False else tpp),
        in_specs=[
            pl.BlockSpec((K, D), lambda c, i: (0, 0)),   # codebook (resident)
            pl.BlockSpec((1, K), lambda c, i: (0, 0)),   # ||w||^2 (resident)
            pl.BlockSpec((tile, D), x_index_map),        # x streamed over N
        ],
        out_specs=(
            pl.BlockSpec((None, K, D), lambda c, i: (c, 0, 0)),
            pl.BlockSpec((None, 1, K), lambda c, i: (c, 0, 0)),
            pl.BlockSpec((None, 1, 1), lambda c, i: (c, 0, 0)),
        ),
        compiler_params=pltpu.CompilerParams(
            dimension_semantics=("parallel", "arbitrary"),
            vmem_limit_bytes=vmem_limit),
        cost_estimate=cost,
    )(w32, wsq, flat)

    # ---- tiny O(K*D) epilogue in plain JAX ----------------------------------
    dw = jnp.sum(dw_p, axis=0)                    # (K, D)
    counts = jnp.sum(cnt_p, axis=0)[0]            # (K,)
    sum_xx = jnp.sum(xx_p)                        # scalar

    new_ecs = ecs32 * decay + (1.0 - decay) * counts
    n_total = jnp.sum(new_ecs)
    new_ecs = (new_ecs + eps) / (n_total + K * eps) * n_total
    new_ema_w = ema32 * decay + (1.0 - decay) * dw
    new_w = new_ema_w / new_ecs[:, None]

    # mean||enc @ new_w - x||^2 via the algebraic identity:
    #   sum_k counts_k*||new_w_k||^2 - 2*sum(new_w*dw) + sum(x*x)
    w_norm_sq = jnp.sum(new_w * new_w, axis=1)
    sq_err = jnp.sum(counts * w_norm_sq) - 2.0 * jnp.sum(new_w * dw) + sum_xx
    e_latent_loss = sq_err / float(N * D)
    loss_vq = commitment_cost * e_latent_loss     # EMA branch of the module

    # TODO(synk): the PyTorch module mutates its buffers/parameters in place;
    # here the updated EMA state / codebook are returned functionally.
    return (loss_vq, None, None), new_w, new_ema_w, new_ecs


def _reference_forward(inputs, weight, ema_w, ema_cluster_size,
                       commitment_cost=0.25, decay=0.9, eps=1e-5):
    """Pure-JAX mirror of the PyTorch forward, for validation."""
    K, D = weight.shape
    flat = inputs.reshape(-1, D).astype(jnp.float32)
    dist = (jnp.sum(flat ** 2, axis=1, keepdims=True)
            + jnp.sum(weight ** 2, axis=1)
            - 2.0 * flat @ weight.T)
    idx = jnp.argmin(dist, axis=1)
    enc = jax.nn.one_hot(idx, K, dtype=jnp.float32)
    ecs = ema_cluster_size * decay + (1 - decay) * jnp.sum(enc, axis=0)
    n = jnp.sum(ecs)
    ecs = (ecs + eps) / (n + K * eps) * n
    dw = enc.T @ flat
    new_ema_w = ema_w * decay + (1 - decay) * dw
    new_w = new_ema_w / ecs[:, None]
    quantized = (enc @ new_w).reshape(inputs.shape)
    e_latent = jnp.mean((quantized - inputs) ** 2)
    return commitment_cost * e_latent, new_w, new_ema_w, ecs


if __name__ == "__main__":
    # Module hyperparameters (consistent with __init__):
    num_gestures = 16                          # num_embeddings (K)
    win_size = 8
    num_pellets = 4
    embedding_dim = win_size * num_pellets     # D = 32

    key = jax.random.PRNGKey(0)
    k_in, k_w, k_ema = jax.random.split(key, 3)

    weight = jax.random.normal(k_w, (num_gestures, embedding_dim), jnp.float32)
    ema_w = jax.random.normal(k_ema, (num_gestures, embedding_dim), jnp.float32)
    ema_cluster_size = jnp.zeros((num_gestures,), jnp.float32)

    # Three configs exercise: (a) default D-aware tile (single tile),
    # (b) 2-way parallel partial split over full tiles,
    # (c) ragged last tile + clamped overflow tile across the partial split.
    configs = [
        (2, 8, dict()),
        (2, 8, dict(tile_n=8, chunk_n=8)),
        (2, 9, dict(tile_n=8, chunk_n=8)),
    ]

    for ci, (batch, seq, kw) in enumerate(configs):
        kk = jax.random.fold_in(k_in, ci)
        inputs = jax.random.normal(kk, (batch, seq, embedding_dim), jnp.float32)

        ref_loss, ref_w, ref_ema_w, ref_ecs = _reference_forward(
            inputs, weight, ema_w, ema_cluster_size)

        (loss_vq, _, _), new_w, new_ema_w, new_ecs = vq_vae_forward(
            inputs, weight, ema_w, ema_cluster_size, **kw)
        jax.block_until_ready((loss_vq, new_w, new_ema_w, new_ecs))

        # Tolerances slightly looser than bit-exact: algebraic MSE identity and
        # reassociated reductions.
        assert jnp.allclose(loss_vq, ref_loss, rtol=1e-4, atol=1e-5), (ci, loss_vq, ref_loss)
        assert jnp.allclose(new_ecs, ref_ecs, rtol=1e-4, atol=1e-4), ci
        assert jnp.allclose(new_ema_w, ref_ema_w, rtol=1e-4, atol=1e-4), ci
        assert jnp.allclose(new_w, ref_w, rtol=1e-4, atol=1e-4), ci

    print("KERNEL_OK")
</pallas_src>

<mosaic_0001>
module attributes {stable_mosaic.version = 11 : i64} {
  func.func @_vq_stats_kernel(%arg0: i32, %arg1: i32, %arg2: memref<16x32xf32, #tpu.memory_space<vmem>>, %arg3: memref<1x16xf32, #tpu.memory_space<vmem>>, %arg4: memref<16x32xf32, #tpu.memory_space<vmem>>, %arg5: memref<1x16x32xf32, #tpu.memory_space<vmem>>, %arg6: memref<1x1x16xf32, #tpu.memory_space<vmem>>, %arg7: memref<1x1x1xf32, #tpu.memory_space<vmem>>) attributes {dimension_semantics = [#tpu.dimension_semantics<parallel>, #tpu.dimension_semantics<arbitrary>], iteration_bounds = array<i64: 1, 1>, scalar_prefetch = 0 : i64, scratch_operands = 0 : i64, tpu.core_type = #tpu.core_type<tc>, window_params = [{pipeline_mode = #tpu.pipeline_mode<synchronous>, transform_indices = @transform_0, window_bounds = array<i64: 16, 32>}, {pipeline_mode = #tpu.pipeline_mode<synchronous>, transform_indices = @transform_1, window_bounds = array<i64: 1, 16>}, {transform_indices = @transform_2, window_bounds = array<i64: 16, 32>}, {transform_indices = @transform_3, window_bounds = array<i64: 1, 16, 32>}, {transform_indices = @transform_4, window_bounds = array<i64: 1, 1, 16>}, {transform_indices = @transform_5, window_bounds = array<i64: 1, 1, 1>}]} {
    %c0_i32 = arith.constant 0 : i32
    %0 = arith.cmpi eq, %arg1, %c0_i32 : i32
    %1 = arith.extui %0 : i1 to i32
    %c0_i32_0 = arith.constant 0 : i32
    %2 = arith.cmpi ne, %1, %c0_i32_0 : i32
    scf.if %2 {
      %cst_30 = arith.constant 0.000000e+00 : f32
      %51 = vector.broadcast %cst_30 : f32 to vector<16x32xf32>
      %c0_31 = arith.constant 0 : index
      %c0_32 = arith.constant 0 : index
      %c0_33 = arith.constant 0 : index
      %52 = vector.load %arg5[%c0_31, %c0_32, %c0_33] : memref<1x16x32xf32, #tpu.memory_space<vmem>>, vector<1x16x32xf32>
      %53 = vector.shape_cast %52 : vector<1x16x32xf32> to vector<16x32xf32>
      %54 = vector.shape_cast %51 : vector<16x32xf32> to vector<1x16x32xf32>
      tpu.vector_store %arg5[%c0_31, %c0_32, %c0_33], %54 {strides = array<i32>} : memref<1x16x32xf32, #tpu.memory_space<vmem>>, vector<1x16x32xf32>,
      %cst_34 = arith.constant 0.000000e+00 : f32
      %55 = vector.broadcast %cst_34 : f32 to vector<1x16xf32>
      %c0_35 = arith.constant 0 : index
      %c0_36 = arith.constant 0 : index
      %c0_37 = arith.constant 0 : index
      %56 = vector.load %arg6[%c0_35, %c0_36, %c0_37] : memref<1x1x16xf32, #tpu.memory_space<vmem>>, vector<1x1x16xf32>
      %57 = vector.shape_cast %56 : vector<1x1x16xf32> to vector<1x16xf32>
      %58 = vector.shape_cast %55 : vector<1x16xf32> to vector<1x1x16xf32>
      tpu.vector_store %arg6[%c0_35, %c0_36, %c0_37], %58 {strides = array<i32>} : memref<1x1x16xf32, #tpu.memory_space<vmem>>, vector<1x1x16xf32>,
      %cst_38 = arith.constant 0.000000e+00 : f32
      %59 = vector.broadcast %cst_38 : f32 to vector<1x1xf32>
      %c0_39 = arith.constant 0 : index
      %c0_40 = arith.constant 0 : index
      %c0_41 = arith.constant 0 : index
      %60 = vector.load %arg7[%c0_39, %c0_40, %c0_41] : memref<1x1x1xf32, #tpu.memory_space<vmem>>, vector<1x1x1xf32>
      %61 = vector.shape_cast %60 : vector<1x1x1xf32> to vector<1x1xf32>
      %62 = vector.shape_cast %59 : vector<1x1xf32> to vector<1x1x1xf32>
      tpu.vector_store %arg7[%c0_39, %c0_40, %c0_41], %62 {strides = array<i32>} : memref<1x1x1xf32, #tpu.memory_space<vmem>>, vector<1x1x1xf32>,
    } else {
    }
    %c0 = arith.constant 0 : index
    %c0_1 = arith.constant 0 : index
    %3 = vector.load %arg2[%c0, %c0_1] : memref<16x32xf32, #tpu.memory_space<vmem>>, vector<16x32xf32>
    %c0_2 = arith.constant 0 : index
    %c0_3 = arith.constant 0 : index
    %4 = vector.load %arg3[%c0_2, %c0_3] : memref<1x16xf32, #tpu.memory_space<vmem>>, vector<1x16xf32>
    %c0_4 = arith.constant 0 : index
    %c0_5 = arith.constant 0 : index
    %5 = vector.load %arg4[%c0_4, %c0_5] : memref<16x32xf32, #tpu.memory_space<vmem>>, vector<16x32xf32>
    %cst = arith.constant dense<0.000000e+00> : vector<16x16xf32>
    %6 = tpu.matmul %5, %3, %cst {dimension_numbers = #tpu.dot_dimension_numbers<[1], [1], [0], [0], [0, 0, 1, 0], [], []>} : vector<16x32xf32>, vector<16x32xf32>, vector<16x16xf32> -> vector<16x16xf32>
    %cst_6 = arith.constant 2.000000e+00 : f32
    %7 = vector.broadcast %cst_6 : f32 to vector<16x16xf32>
    %8 = arith.mulf %7, %6 : vector<16x16xf32>
    %9 = vector.broadcast %4 : vector<1x16xf32> to vector<16x16xf32>
    %10 = arith.subf %9, %8 : vector<16x16xf32>
    %11 = tpu.iota {dimensions = array<i32: 1>} : vector<16x16xi32>
    %cst_7 = arith.constant dense<0x7F800000> : vector<16xf32>
    %12 = vector.multi_reduction <minimumf>, %10, %cst_7 [1] : vector<16x16xf32> to vector<16xf32>
    %13 = vector.shape_cast %12 : vector<16xf32> to vector<16x1xf32>
    %14 = vector.broadcast %13 : vector<16x1xf32> to vector<16x16xf32>
    %15 = arith.cmpf oeq, %10, %14 : vector<16x16xf32>
    %c16_i32 = arith.constant 16 : i32
    %16 = vector.broadcast %c16_i32 : i32 to vector<16x16xi32>
    %17 = arith.select %15, %11, %16 : vector<16x16xi1>, vector<16x16xi32>
    %cst_8 = arith.constant dense<2147483647> : vector<16xi32>
    %18 = vector.multi_reduction <minsi>, %17, %cst_8 [1] : vector<16x16xi32> to vector<16xi32>
    %19 = vector.shape_cast %18 : vector<16xi32> to vector<16x1xi32>
    %20 = vector.broadcast %19 : vector<16x1xi32> to vector<16x16xi32>
    %21 = arith.cmpi eq, %11, %20 : vector<16x16xi32>
    %22 = arith.extui %21 : vector<16x16xi1> to vector<16x16xi32>
    %23 = arith.sitofp %22 : vector<16x16xi32> to vector<16x16xf32>
    %c0_9 = arith.constant 0 : index
    %c0_10 = arith.constant 0 : index
    %c0_11 = arith.constant 0 : index
    %24 = vector.load %arg5[%c0_9, %c0_10, %c0_11] : memref<1x16x32xf32, #tpu.memory_space<vmem>>, vector<1x16x32xf32>
    %25 = vector.shape_cast %24 : vector<1x16x32xf32> to vector<16x32xf32>
    %cst_12 = arith.constant dense<0.000000e+00> : vector<16x32xf32>
    %26 = tpu.matmul %23, %5, %cst_12 {dimension_numbers = #tpu.dot_dimension_numbers<[0], [0], [1], [1], [0, 1, 1, 1], [], []>} : vector<16x16xf32>, vector<16x32xf32>, vector<16x32xf32> -> vector<16x32xf32>
    %27 = arith.addf %25, %26 : vector<16x32xf32>
    %c0_13 = arith.constant 0 : index
    %c0_14 = arith.constant 0 : index
    %c0_15 = arith.constant 0 : index
    %28 = vector.load %arg5[%c0_13, %c0_14, %c0_15] : memref<1x16x32xf32, #tpu.memory_space<vmem>>, vector<1x16x32xf32>
    %29 = vector.shape_cast %28 : vector<1x16x32xf32> to vector<16x32xf32>
    %30 = vector.shape_cast %27 : vector<16x32xf32> to vector<1x16x32xf32>
    tpu.vector_store %arg5[%c0_13, %c0_14, %c0_15], %30 {strides = array<i32>} : memref<1x16x32xf32, #tpu.memory_space<vmem>>, vector<1x16x32xf32>,
    %c0_16 = arith.constant 0 : index
    %c0_17 = arith.constant 0 : index
    %c0_18 = arith.constant 0 : index
    %31 = vector.load %arg6[%c0_16, %c0_17, %c0_18] : memref<1x1x16xf32, #tpu.memory_space<vmem>>, vector<1x1x16xf32>
    %32 = vector.shape_cast %31 : vector<1x1x16xf32> to vector<1x16xf32>
    %cst_19 = arith.constant dense<0.000000e+00> : vector<16xf32>
    %33 = vector.multi_reduction <add>, %23, %cst_19 [0] : vector<16x16xf32> to vector<16xf32>
    %34 = vector.shape_cast %33 : vector<16xf32> to vector<1x16xf32>
    %35 = arith.addf %32, %34 : vector<1x16xf32>
    %c0_20 = arith.constant 0 : index
    %c0_21 = arith.constant 0 : index
    %c0_22 = arith.constant 0 : index
    %36 = vector.load %arg6[%c0_20, %c0_21, %c0_22] : memref<1x1x16xf32, #tpu.memory_space<vmem>>, vector<1x1x16xf32>
    %37 = vector.shape_cast %36 : vector<1x1x16xf32> to vector<1x16xf32>
    %38 = vector.shape_cast %35 : vector<1x16xf32> to vector<1x1x16xf32>
    tpu.vector_store %arg6[%c0_20, %c0_21, %c0_22], %38 {strides = array<i32>} : memref<1x1x16xf32, #tpu.memory_space<vmem>>, vector<1x1x16xf32>,
    %c0_23 = arith.constant 0 : index
    %c0_24 = arith.constant 0 : index
    %c0_25 = arith.constant 0 : index
    %39 = vector.load %arg7[%c0_23, %c0_24, %c0_25] : memref<1x1x1xf32, #tpu.memory_space<vmem>>, vector<1x1x1xf32>
    %40 = vector.shape_cast %39 : vector<1x1x1xf32> to vector<1x1xf32>
    %41 = arith.mulf %5, %5 : vector<16x32xf32>
    %42 = vector.shape_cast %41 : vector<16x32xf32> to vector<1x16x32xf32>
    %cst_26 = arith.constant dense<0.000000e+00> : vector<1xf32>
    %43 = vector.multi_reduction <add>, %42, %cst_26 [1, 2] : vector<1x16x32xf32> to vector<1xf32>
    %44 = vector.shape_cast %43 : vector<1xf32> to vector<1x1x1xf32>
    %45 = vector.extract %44[0, 0, 0] : f32 from vector<1x1x1xf32>
    %46 = vector.broadcast %45 : f32 to vector<1x1xf32>
    %47 = arith.addf %40, %46 : vector<1x1xf32>
    %c0_27 = arith.constant 0 : index
    %c0_28 = arith.constant 0 : index
    %c0_29 = arith.constant 0 : index
    %48 = vector.load %arg7[%c0_27, %c0_28, %c0_29] : memref<1x1x1xf32, #tpu.memory_space<vmem>>, vector<1x1x1xf32>
    %49 = vector.shape_cast %48 : vector<1x1x1xf32> to vector<1x1xf32>
    %50 = vector.shape_cast %47 : vector<1x1xf32> to vector<1x1x1xf32>
    tpu.vector_store %arg7[%c0_27, %c0_28, %c0_29], %50 {strides = array<i32>} : memref<1x1x1xf32, #tpu.memory_space<vmem>>, vector<1x1x1xf32>,
    return
  }
  func.func @transform_0(%arg0: i32, %arg1: i32) -> (i32, i32) {
    %c0_i32 = arith.constant 0 : i32
    %c0_i32_0 = arith.constant 0 : i32
    %c0_i32_1 = arith.constant 0 : i32
    return %c0_i32, %c0_i32_0 : i32, i32
  }
  func.func @transform_1(%arg0: i32, %arg1: i32) -> (i32, i32) {
    %c0_i32 = arith.constant 0 : i32
    %c0_i32_0 = arith.constant 0 : i32
    %c0_i32_1 = arith.constant 0 : i32
    return %c0_i32, %c0_i32_0 : i32, i32
  }
  func.func @transform_2(%arg0: i32, %arg1: i32) -> (i32, i32) {
    %c1_i32 = arith.constant 1 : i32
    %0 = arith.muli %arg0, %c1_i32 : i32
    %1 = arith.addi %0, %arg1 : i32
    %c0_i32 = arith.constant 0 : i32
    %c0_i32_0 = arith.constant 0 : i32
    return %1, %c0_i32 : i32, i32
  }
  func.func @transform_3(%arg0: i32, %arg1: i32) -> (i32, i32, i32) {
    %c0_i32 = arith.constant 0 : i32
    %c0_i32_0 = arith.constant 0 : i32
    %c0_i32_1 = arith.constant 0 : i32
    return %arg0, %c0_i32, %c0_i32_0 : i32, i32, i32
  }
  func.func @transform_4(%arg0: i32, %arg1: i32) -> (i32, i32, i32) {
    %c0_i32 = arith.constant 0 : i32
    %c0_i32_0 = arith.constant 0 : i32
    %c0_i32_1 = arith.constant 0 : i32
    return %arg0, %c0_i32, %c0_i32_0 : i32, i32, i32
  }
  func.func @transform_5(%arg0: i32, %arg1: i32) -> (i32, i32, i32) {
    %c0_i32 = arith.constant 0 : i32
    %c0_i32_0 = arith.constant 0 : i32
    %c0_i32_1 = arith.constant 0 : i32
    return %arg0, %c0_i32, %c0_i32_0 : i32, i32, i32
  }
}

</mosaic_0001>

<bundles_post_ra>
// kernel: tpu_custom_call.1
= control target key start
LH: loop header
LB: loop body
LE: loop exit
PB: predicated region body
PF: predicated region fallthrough
CT: control target
= control target key end

     0   :  { %11 = vsyncpa [#allocation3], 0  ;;  %s725_s0 = inlined_call_operand.hbm [shape: f32[16,32], index: 0, kind: input, shape index: {}]   ;;  %s726_s1 = inlined_call_operand.vmem [shape: f32[1,16], index: 1, kind: input, shape index: {}]   ;;  %s727_s2 = inlined_call_operand.hbm [shape: f32[16,32], index: 2, kind: input, shape index: {}]   ;;  %s728_s3 = inlined_call_operand.hbm [shape: f32[1,16,32], index: 3, kind: output, shape index: {0}]   ;;  %s729_s4 = inlined_call_operand.hbm [shape: f32[1,1,16], index: 4, kind: output, shape index: {1}]   ;;  %s730_s5 = inlined_call_operand.hbm [shape: f32[1,1,1], index: 5, kind: output, shape index: {2}]  }
   0x1   :  { %12 = vsyncpa [#allocation6], 0 }
   0x2   :  { %13 = vsyncpa [#allocation4], 0 }
   0x3   :  { %14 = vsyncpa [#allocation9], 0  ;;  %s581_s18 = smov [#allocation2]   ;;  %s463_s22 = scalar_lea.hbm %s725_s0, 256 }
   0x4   :  { %s20_s19 = sshll.u32 %s581_s18, 4  ;;  %p464_p0 = scmp.ne.s32.totalorder %s725_s0, %s463_s22  ;;  %s21_s19 = int_to_ptr.vmem [resolvable:$true] %s20_s19 }
   0x5   :  { %p467_p1 = scmp.lt.u32.totalorder %s463_s22, %s725_s0 }
   0x7   :  { %p469_p2 = pnand %p467_p1, %p464_p0 }
   0x9   :  { %472 = shalt.err (!%p469_p2)
}
   0xa   :  { %s473_s27 = scalar_lea.vmem %s21_s19, 256  ;;  %p478_p4 = scmp.lt.s32.totalorder %s21_s19, %s21_s19 }
   0xb   :  { %p474_p3 = scmp.ne.s32.totalorder %s21_s19, %s473_s27  ;;  %p479_p5 = scmp.lt.s32.totalorder %s473_s27, %s473_s27 }
   0xd   :  { %p480_p6 = por %p479_p5, %p478_p4 }
   0xf   :  { %p481_p7 = pnand %p480_p6, %p474_p3 }
  0x11   :  { %484 = shalt.err (!%p481_p7)
}
  0x12   :  { %s582_s28 = smov 128   ;;  %s583_s29 = smov 8  }
  0x13   :  { %26 = dma.hbm_to_vmem [thread:$0]  %s725_s0, 256, %s21_s19, [#allocation3], %s582_s28, %s582_s28, %s583_s29  }
  0x14   :  { %s584_s7 = smov [#allocation5]   ;;  %s485_s11 = scalar_lea.hbm %s727_s2, 256 }
  0x15   :  { %s38_s8 = sshll.u32 %s584_s7, 4  ;;  %p486_p8 = scmp.ne.s32.totalorder %s727_s2, %s485_s11  ;;  %s39_s8 = int_to_ptr.vmem [resolvable:$true] %s38_s8 }
  0x16   :  { %p489_p9 = scmp.lt.u32.totalorder %s485_s11, %s727_s2 }
  0x18   :  { %p491_p10 = pnand %p489_p9, %p486_p8 }
  0x1a   :  { %494 = shalt.err (!%p491_p10)
}
  0x1b   :  { %s495_s16 = scalar_lea.vmem %s39_s8, 256  ;;  %p500_p12 = scmp.lt.s32.totalorder %s39_s8, %s39_s8 }
  0x1c   :  { %p496_p11 = scmp.ne.s32.totalorder %s39_s8, %s495_s16  ;;  %p501_p13 = scmp.lt.s32.totalorder %s495_s16, %s495_s16 }
  0x1e   :  { %p502_p0 = por %p501_p13, %p500_p12 }
  0x20   :  { %p503_p1 = pnand %p502_p0, %p496_p11 }
  0x22   :  { %506 = shalt.err (!%p503_p1)
}
  0x23   :  { %44 = dma.hbm_to_vmem [thread:$0]  %s727_s2, 256, %s39_s8, [#allocation6], %s582_s28, %s582_s28, %s583_s29  }
  0x24   :  { %573 = dma.done.wait [#allocation3], 256  }
  0x25   :  { %574 = vsyncadd [#allocation3], 4294967040 }
  0x26   :  { %575 = dma.done.wait [#allocation6], 256  }
  0x27   :  { %576 = vsyncadd [#allocation6], 4294967040  ;;  %vm57_vm0 = vcmask 261120   ;;  %v64_v0 = vld [vmem:[#allocation2] sm:$0xff]  ;;  %v65_v1 = vld [vmem:[#allocation2 + $0x8] sm:$0xff]  ;;  %vm169_vm2 = vcmask 130048   ;;  %v167_v14 = vlaneseq }
  0x28   :  { %vm444_vm1 = vmpackc.low %vm57_vm0, %vm57_vm0  ;;  %v651_v2 = vld [vmem:[#allocation5] sm:$0xff]  ;;  %v443_v3 = vpack.c.bf16 %v65_v1, %v64_v0  ;;  %v655_v4 = vld [vmem:[#allocation5 + $0x8] sm:$0xff]  ;;  %v585_v34 = vmov 0.0   ;;  %vm62_vm7 = vcmask 0   ;;  %vm60_vm8 = vcmask 122880   ;;  %s586_s19 = smov [#allocation8]  }
  0x29   :  { %433 = vmatprep.mubr.msk.f32.mxu0 %vm57_vm0, %v651_v2  ;;  %v416_v7 = vld [vmem:[%s726_s1] ss:$0 sm:$0xff]  ;;  %v168_v15 = vand.u32 127, %v167_v14  ;;  %58 = vst.msk [vmem:[#allocation7] sm:$0xff] %vm57_vm0, %v585_v34  ;;  %59 = vst.msk [vmem:[#allocation7 + $0x8] sm:$0xff] %vm57_vm0, %v585_v34  ;;  %v449_v45 = vpack.c.bf16 %v655_v4, %v651_v2  ;;  %v349_v46 = vmul.f32 %v651_v2, %v651_v2  ;;  %s385_s20 = sshll.u32 %s586_s19, 4  ;;  %s386_s20 = int_to_ptr.vmem [resolvable:$true] %s385_s20 }
  0x2a   :  { %445 = vmatprep.subr.msk.bf16.mxu0 %vm444_vm1, %v443_v3  ;;  %63 = vst.msk [vmem:[#allocation10] sm:$0x1] %vm62_vm7, %v585_v34  ;;  %v350_v48 = vmul.f32 %v655_v4, %v655_v4  ;;  %s507_s21 = scalar_lea.vmem %s386_s20, 16  ;;  %s511_s22 = scalar_lea.vmem %s386_s20, 32 }
  0x2b   :  { %448 = vmatpush3.bf16.xpose.msk.msra.mxu0 %vm444_vm1, %v443_v3  ;;  %61 = vst.msk [vmem:[#allocation8] sm:$0x1] %vm60_vm8, %v585_v34  ;;  %450 = vmatprep.subr.bf16.mxu1 %v449_v45  ;;  %v351_v52 = vsel %vm57_vm0, %v349_v46, 0.0  ;;  %p508_p2 = scmp.ne.s32.totalorder %s386_s20, %s507_s21  ;;  %p512_p3 = scmp.lt.s32.totalorder %s386_s20, %s386_s20 }
  0x2c   :  { %452 = vmatpush3.bf16.msra.mxu1 %v449_v45  ;;  %v352_v53 = vsel %vm57_vm0, %v350_v48, 0.0  ;;  %p513_p4 = scmp.lt.s32.totalorder %s511_s22, %s507_s21 }
  0x2d   :  { %v353_v55 = vadd.f32 %v352_v53, %v351_v52 }
  0x2e   :  { %p514_p5 = por %p513_p4, %p512_p3 }
  0x30   :  { %p515_p6 = pnand %p514_p5, %p508_p2 }
  0x32   :  { %434 = vmatmul.mubr.msk.f32.vlgmr.msra.gmra.mrb[0].mxu0 %vm57_vm0, %v655_v4  ;;  %v335_v61 = vld [vmem:[#allocation8] sm:$0x1] }
 0x105   :  { %v435_v5 = vpop.f32.mrb[0].mxu0 }
 0x106   :  { %v148_v6 = vpop.f32.mrb[1].mxu0  ;;  %v158_v8 = vmul.f32 2.0, %v435_v5 }
 0x107   :  { %v157_v9 = vmul.f32 2.0, %v148_v6 }
 0x108   :  { %v166_v12 = vsub.f32 %v416_v7, %v158_v8 }
 0x109   :  { %v165_v10 = vsub.f32 %v416_v7, %v157_v9  ;;  %v348_v9 = vld [vmem:[#allocation10] sm:$0x1] }
 0x10a   :  { %v173_v13 = vsel %vm169_vm2, %v166_v12, inf }
 0x10b   :  { %v170_v11 = vsel %vm169_vm2, %v165_v10, inf }
 0x10c   :  { %171 = vmin.xlane.f32.xlu0 %v170_v11 }
 0x110   :  { %174 = vmin.xlane.f32.xlu0 %v173_v13 }
 0x199   :  { %v172_v16 = vpop.xlane.xlu0 %171 }
 0x19a   :  { %vm176_vm3 = vcmp.eq.f32.partialorder %v165_v10, %v172_v16 }
 0x19b   :  { %v178_v17 = vsel %vm176_vm3, %v168_v15, 16 }
 0x19c   :  { %v180_v18 = vsel %vm169_vm2, %v178_v17, 2147483647 }
 0x19d   :  { %v175_v19 = vpop.xlane.xlu0 %174  ;;  %v182_v20 = vshra.s32 %v180_v18, 16  ;;  %v181_v26 = vand.u32 65535, %v180_v18 }
 0x19e   :  { %vm177_vm4 = vcmp.eq.f32.partialorder %v166_v12, %v175_v19 }
 0x19f   :  { %v179_v21 = vsel %vm177_vm4, %v168_v15, 16  ;;  %v184_v22 = vcvt.s32.f32 %v182_v20  ;;  %v183_v28 = vcvt.s32.f32 %v181_v26 }
 0x1a0   :  { %v195_v23 = vsel %vm169_vm2, %v179_v21, 2147483647 }
 0x1a1   :  { %185 = vmin.xlane.f32.xlu1 %v184_v22  ;;  %v197_v24 = vshra.s32 %v195_v23, 16  ;;  %v196_v29 = vand.u32 65535, %v195_v23 }
 0x1a3   :  { %v199_v25 = vcvt.s32.f32 %v197_v24  ;;  %v198_v32 = vcvt.s32.f32 %v196_v29 }
 0x1a5   :  { %200 = vmin.xlane.f32.xlu1 %v199_v25 }
 0x22e   :  { %v186_v27 = vpop.xlane.xlu1 %185 }
 0x22f   :  { %vm187_vm5 = vcmp.eq.f32.partialorder %v184_v22, %v186_v27  ;;  %v192_v35 = vcvt.f32.s32 %v186_v27 }
 0x230   :  { %v188_v30 = vsel %vm187_vm5, %v183_v28, inf }
 0x231   :  { %189 = vmin.xlane.f32.xlu0 %v188_v30  ;;  %v193_v37 = vshll.u32 %v192_v35, 16 }
 0x232   :  { %v201_v31 = vpop.xlane.xlu1 %200 }
 0x233   :  { %vm202_vm6 = vcmp.eq.f32.partialorder %v199_v25, %v201_v31  ;;  %v207_v38 = vcvt.f32.s32 %v201_v31 }
 0x234   :  { %v203_v33 = vsel %vm202_vm6, %v198_v32, inf }
 0x235   :  { %204 = vmin.xlane.f32.xlu1 %v203_v33  ;;  %v208_v42 = vshll.u32 %v207_v38, 16 }
 0x239   :  { %354 = vadd.xlane.f32.xlu1 %v353_v55 }
 0x2be   :  { %v190_v36 = vpop.xlane.xlu0 %189 }
 0x2bf   :  { %v191_v39 = vcvt.f32.s32 %v190_v36 }
 0x2c1   :  { %v194_v40 = vadd.s32 %v193_v37, %v191_v39 }
 0x2c2   :  { %v205_v41 = vpop.xlane.xlu1 %204 }
 0x2c3   :  { %v206_v43 = vcvt.f32.s32 %v205_v41  ;;  %vm210_vm9 = vcmp.eq.s32.totalorder %v168_v15, %v194_v40 }
 0x2c4   :  { %v417_v44 = vsel %vm210_vm9, 1.0, %v585_v34 }
 0x2c5   :  { %v209_v47 = vadd.s32 %v208_v42, %v206_v43  ;;  %218 = vxpose.xlu0.b32.start [1/2] (short) (narrow) %v417_v44, 16  ;;  %v336_v50 = vsel %vm169_vm2, %v417_v44, 0.0 }
 0x2c6   :  { %v355_v2 = vpop.xlane.xlu1 %354 }
 0x2c7   :  { %vm211_vm10 = vcmp.eq.s32.totalorder %v168_v15, %v209_v47  ;;  %v356_v3 = vrot.slane %v355_v2, 4 }
 0x2c8   :  { %v418_v49 = vsel %vm211_vm10, 1.0, %v585_v34 }
 0x2c9   :  { %v337_v51 = vsel %vm169_vm2, %v418_v49, 0.0  ;;  %219 = vxpose.xlu0.b32.end [2/2] (short) (narrow) %v418_v49, 16  ;;  %v357_v4 = vadd.f32 %v356_v3, %v355_v2 }
 0x2ca   :  { %v338_v54 = vadd.f32 %v337_v51, %v336_v50 }
 0x2cb   :  { %v358_v5 = vrot.slane %v357_v4, 2 }
 0x2cc   :  { %v339_v56 = vrot.slane %v338_v54, 4 }
 0x2cd   :  { %v359_v6 = vadd.f32 %v358_v5, %v357_v4 }
 0x2ce   :  { %v340_v57 = vadd.f32 %v339_v56, %v338_v54 }
 0x2cf   :  { %v360_v7 = vrot.slane %v359_v6, 1 }
 0x2d0   :  { %v341_v58 = vrot.slane %v340_v57, 2 }
 0x2d1   :  { %v361_v8 = vadd.f32 %v360_v7, %v359_v6 }
 0x2d2   :  { %v342_v59 = vadd.f32 %v341_v58, %v340_v57 }
 0x2d3   :  { %453 = vpush %v361_v8 }
 0x2d4   :  { %v343_v60 = vrot.slane %v342_v59, 1 }
 0x2d6   :  { %v344_v62 = vadd.f32 %v343_v60, %v342_v59 }
 0x2d8   :  { %v345_v63 = vadd.f32 %v344_v62, %v335_v61 }
 0x2da   :  { %347 = vst.msk [vmem:[#allocation8] sm:$0x1] %vm60_vm8, %v345_v63 }
 0x304   :  { %s454_s1 = spop %453 }
 0x305   :  { %v363_v10 = vstv %s454_s1 }
 0x306   :  { %v364_v11 = vadd.f32 %v363_v10, %v348_v9 }
 0x308   :  { %366 = vst.msk [vmem:[#allocation10] sm:$0x1] %vm62_vm7, %v364_v11 }
 0x345   :  { %v234_v0 = vpop.trf.xlu0 }
 0x346   :  { %440 = vmatprep.mubr.msk.f32.mxu1 %vm169_vm2, %v234_v0 }
 0x349   :  { %v235_v1 = vpop.trf.xlu0 }
 0x34a   :  { %441 = vmatmul.mubr.msk.f32.vlgmr.msra.gmra.mrb[0].mxu1 %vm169_vm2, %v235_v1 }
 0x34b   :  { %518 = shalt.err (!%p515_p6)
}
 0x34c   :  { %s519_s25 = scalar_lea.hbm %s729_s4, 16 }
 0x34d   :  { %p520_p7 = scmp.ne.s32.totalorder %s729_s4, %s519_s25  ;;  %p523_p8 = scmp.lt.u32.totalorder %s519_s25, %s729_s4 }
 0x34f   :  { %p525_p9 = pnand %p523_p8, %p520_p7 }
 0x351   :  { %528 = shalt.err (!%p525_p9)
}
 0x352   :  { %388 = dma.vmem_to_hbm [thread:$0]  %s386_s20, 16, %s729_s4, [#allocation9]  }
 0x353   :  { %s587_s9 = smov [#allocation10]  }
 0x354   :  { %s395_s10 = sshll.u32 %s587_s9, 4  ;;  %s396_s10 = int_to_ptr.vmem [resolvable:$true] %s395_s10 }
 0x355   :  { %s529_s11 = scalar_lea.vmem %s396_s10, 16  ;;  %s533_s12 = scalar_lea.vmem %s396_s10, 32 }
 0x356   :  { %p530_p10 = scmp.ne.s32.totalorder %s396_s10, %s529_s11  ;;  %p534_p11 = scmp.lt.s32.totalorder %s396_s10, %s396_s10 }
 0x357   :  { %p535_p12 = scmp.lt.s32.totalorder %s533_s12, %s529_s11 }
 0x359   :  { %p536_p13 = por %p535_p12, %p534_p11 }
 0x35b   :  { %p537_p0 = pnand %p536_p13, %p530_p10 }
 0x35d   :  { %540 = shalt.err (!%p537_p0)
}
 0x35e   :  { %s541_s15 = scalar_lea.hbm %s730_s5, 16 }
 0x35f   :  { %p542_p1 = scmp.ne.s32.totalorder %s730_s5, %s541_s15  ;;  %p545_p2 = scmp.lt.u32.totalorder %s541_s15, %s730_s5 }
 0x361   :  { %p547_p3 = pnand %p545_p2, %p542_p1 }
 0x363   :  { %550 = shalt.err (!%p547_p3)
}
 0x364   :  { %398 = dma.vmem_to_hbm [thread:$0]  %s396_s10, 16, %s730_s5, [#allocation9]   ;;  %v217_v12 = vld [vmem:[#allocation7 + $0x8] sm:$0xff]  ;;  %v216_v13 = vld [vmem:[#allocation7] sm:$0xff] }
 0x365   :  { %s588_s1 = smov [#allocation7]  }
 0x366   :  { %s372_s19 = sshll.u32 %s588_s1, 4  ;;  %s373_s19 = int_to_ptr.vmem [resolvable:$true] %s372_s19 }
 0x367   :  { %s551_s20 = scalar_lea.vmem %s373_s19, 256  ;;  %p556_p5 = scmp.lt.s32.totalorder %s373_s19, %s373_s19 }
 0x368   :  { %p552_p4 = scmp.ne.s32.totalorder %s373_s19, %s551_s20  ;;  %p557_p6 = scmp.lt.s32.totalorder %s551_s20, %s551_s20 }
 0x36a   :  { %p558_p7 = por %p557_p6, %p556_p5 }
 0x36c   :  { %p559_p8 = pnand %p558_p7, %p552_p4 }
 0x41d   :  { %v442_v14 = vpop.f32.mrb[0].mxu1 }
 0x41e   :  { %v332_v15 = vadd.f32 %v442_v14, %v217_v12  ;;  %v322_v16 = vpop.f32.mrb[1].mxu1 }
 0x41f   :  { %v331_v17 = vadd.f32 %v322_v16, %v216_v13 }
 0x420   :  { %334 = vst.msk [vmem:[#allocation7 + $0x8] sm:$0xff] %vm57_vm0, %v332_v15 }
 0x421   :  { %333 = vst.msk [vmem:[#allocation7] sm:$0xff] %vm57_vm0, %v331_v17 }
 0x422   :  { %562 = shalt.err (!%p559_p8)
}
 0x423   :  { %s563_s22 = scalar_lea.hbm %s728_s3, 256 }
 0x424   :  { %p564_p9 = scmp.ne.s32.totalorder %s728_s3, %s563_s22  ;;  %p567_p10 = scmp.lt.u32.totalorder %s563_s22, %s728_s3 }
 0x426   :  { %p569_p11 = pnand %p567_p10, %p564_p9 }
 0x428   :  { %572 = shalt.err (!%p569_p11)
}
 0x429   :  { %378 = dma.vmem_to_hbm [thread:$0]  %s373_s19, 256, %s728_s3, [#allocation4], %s582_s28, %s582_s28, %s583_s29  }
 0x42a   :  { %577 = dma.done.wait [#allocation4], 256  }
 0x42b   :  { %578 = vsyncadd [#allocation4], 4294967040 }
 0x42c   :  { %579 = dma.done.wait [#allocation9], 32  }
 0x42d   :  { %580 = vsyncadd [#allocation9], 4294967264 }
 0x42e   :  { %408 = vsyncpa [#allocation3], 1 }
 0x42f   :  { %409 = vsyncpa [#allocation6], 1 }
 0x430   :  { %410 = vsyncpa [#allocation4], 1 }
 0x431   :  { %411 = vsyncpa [#allocation9], 1 }

</bundles_post_ra>
